<compile_context>
chip_gen: v7x
topology: tpu7x:2x2x1
jax: 0.10.0
libtpu: 0.0.40
codegen_flags: <defaults>
</compile_context>

<pallas_src>
import jax
import jax.numpy as jnp
from jax.experimental import pallas as pl
from jax.experimental.pallas import tpu as pltpu

N_PAD = 128  # lane-dense width for the 2-class out_proj


def _round_up(x, m):
    return (x + m - 1) // m * m


def _head_kernel(x_ref, w1_ref, b1_ref, w2_ref, b2_ref, o_ref):
    # x_ref:  [tm, 2H]   (compute dtype)
    # w1_ref: [2H, H]    (compute dtype)     b1_ref: [1, H]     (f32)
    # w2_ref: [H, 128]   (compute dtype, columns >= 2 are zero)
    # b2_ref: [1, 128]   (f32)               o_ref:  [tm, 128]  (f32)
    h = jnp.dot(x_ref[...], w1_ref[...], preferred_element_type=jnp.float32)
    h = jnp.tanh(h + b1_ref[...])
    h = h.astype(w2_ref.dtype)
    o = jnp.dot(h, w2_ref[...], preferred_element_type=jnp.float32) + b2_ref[...]
    o_ref[...] = o.astype(o_ref.dtype)


def prepare_head_params(w_dense, b_dense, w_out, b_out,
                        *, compute_dtype=jnp.float32):
    """One-time (model-init) weight preparation.

    w_dense: [2H, H], b_dense: [H], w_out: [H, 2], b_out: [2]  (x @ W layout).
    Returns params pre-cast to `compute_dtype` with the out_proj zero-padded
    from 2 to 128 lane-dense output columns.
    """
    H = w_dense.shape[1]
    assert w_dense.shape == (2 * H, H)
    w1 = w_dense.astype(compute_dtype)
    b1 = b_dense.reshape(1, H).astype(jnp.float32)
    w2p = jnp.pad(w_out, ((0, 0), (0, N_PAD - w_out.shape[1]))).astype(compute_dtype)
    b2p = jnp.pad(b_out, (0, N_PAD - b_out.shape[0])).reshape(1, N_PAD).astype(jnp.float32)
    return w1, b1, w2p, b2p


def roberta_classification_head(features, prepared_params):
    """features: [B, S, H].  Returns logits [B//2, 2] in float32.

    `prepared_params` comes from prepare_head_params() (hoisted out of the
    per-call path so weight cast/pad is not re-done every forward).
    """
    w1, b1, w2p, b2p = prepared_params
    B, S, H = features.shape
    assert B % 2 == 0, "batch must be even (examples are paired for clone detection)"
    assert w1.shape == (2 * H, H)
    B2 = B // 2
    compute_dtype = w1.dtype

    # [CLS] slice + pair reshape (cheap XLA strided view; see TODO above).
    x = features[:, 0, :].reshape(B2, 2 * H).astype(compute_dtype)
    # Dropout: identity in eval mode.

    act_itemsize = jnp.dtype(compute_dtype).itemsize
    m_align = 16 if act_itemsize == 2 else 8

    block_m = min(512, _round_up(B2, m_align))
    # v7x megacore: only split M across both TensorCores when the activation
    # stream (B2 * 2H bytes) is at least as large as the weight DMA (2H * H
    # bytes), i.e. B2 >= H; otherwise splitting just duplicates the dominant
    # weight DMA into both cores' VMEM.
    if B2 >= H:
        block_m = min(block_m, _round_up(pl.cdiv(B2, 2), m_align))

    m_pad = _round_up(B2, block_m)
    if m_pad != B2:
        x = jnp.pad(x, ((0, m_pad - B2), (0, 0)))

    grid_m = m_pad // block_m

    cost = pl.CostEstimate(
        flops=2 * m_pad * (2 * H) * H + 2 * m_pad * H * N_PAD,
        transcendentals=m_pad * H,
        bytes_accessed=(x.size * act_itemsize
                        + w1.size * act_itemsize
                        + w2p.size * act_itemsize
                        + b1.size * 4 + b2p.size * 4
                        + m_pad * N_PAD * 4),
    )

    # Constant-index_map operands: single-buffered (DMA'd once, VMEM-resident).
    const_buf = pl.Buffered(1)

    out = pl.pallas_call(
        _head_kernel,
        out_shape=jax.ShapeDtypeStruct((m_pad, N_PAD), jnp.float32),
        grid=(grid_m,),
        in_specs=[
            # activations, tiled (and double-buffered) over M
            pl.BlockSpec((block_m, 2 * H), lambda i: (i, 0)),
            # weights / biases: constant index_map, single buffer
            pl.BlockSpec((2 * H, H), lambda i: (0, 0), pipeline_mode=const_buf),
            pl.BlockSpec((1, H), lambda i: (0, 0), pipeline_mode=const_buf),
            pl.BlockSpec((H, N_PAD), lambda i: (0, 0), pipeline_mode=const_buf),
            pl.BlockSpec((1, N_PAD), lambda i: (0, 0), pipeline_mode=const_buf),
        ],
        out_specs=pl.BlockSpec((block_m, N_PAD), lambda i: (i, 0)),
        compiler_params=pltpu.CompilerParams(
            dimension_semantics=("parallel",),  # shards M across cores on v7x
            vmem_limit_bytes=48 << 20,          # headroom for v5e's small default
        ),
        cost_estimate=cost,
    )(x, w1, b1, w2p, b2p)

    return out[:B2, :2]


def _reference(features, w_dense, b_dense, w_out, b_out):
    B, S, H = features.shape
    x = features[:, 0, :].reshape(B // 2, 2 * H)
    h = jnp.tanh(x @ w_dense + b_dense)
    return h @ w_out + b_out


if __name__ == "__main__":
    key = jax.random.PRNGKey(0)
    B, S, H = 4, 8, 32  # 4 examples -> 2 pairs; hidden_size = 32

    k_feat, k_w1, k_b1, k_w2, k_b2 = jax.random.split(key, 5)
    features = jax.random.normal(k_feat, (B, S, H), dtype=jnp.float32)

    # nn.Linear(2H, H) / nn.Linear(H, 2) weights stored transposed for x @ W + b.
    w_dense = jax.random.normal(k_w1, (2 * H, H), dtype=jnp.float32) * 0.02
    b_dense = jax.random.normal(k_b1, (H,), dtype=jnp.float32) * 0.02
    w_out = jax.random.normal(k_w2, (H, 2), dtype=jnp.float32) * 0.02
    b_out = jax.random.normal(k_b2, (2,), dtype=jnp.float32) * 0.02

    ref = _reference(features, w_dense, b_dense, w_out, b_out)

    # --- f32 path: matches the PyTorch module numerics. ---------------------
    # Weight prep is done ONCE (model-init), not per forward call.
    params_f32 = prepare_head_params(w_dense, b_dense, w_out, b_out,
                                     compute_dtype=jnp.float32)
    params_f32 = jax.block_until_ready(params_f32)

    logits = roberta_classification_head(features, params_f32)
    logits = jax.block_until_ready(logits)
    assert logits.shape == (B // 2, 2)
    assert jnp.allclose(logits, ref, atol=1e-4, rtol=1e-4), "f32 mismatch vs reference"

    # Second call re-uses the prepared params (no per-call weight cast/pad).
    logits2 = jax.block_until_ready(roberta_classification_head(features, params_f32))
    assert jnp.allclose(logits2, ref, atol=1e-4, rtol=1e-4)

    # --- bf16 fast path: pre-cast weights halve the dominant weight DMA. ----
    params_bf16 = prepare_head_params(w_dense, b_dense, w_out, b_out,
                                      compute_dtype=jnp.bfloat16)
    params_bf16 = jax.block_until_ready(params_bf16)

    logits_bf16 = roberta_classification_head(features, params_bf16)
    logits_bf16 = jax.block_until_ready(logits_bf16)
    assert logits_bf16.shape == (B // 2, 2)
    # bf16 rounds x / w_dense before the K=2H reduction (f32 accumulation):
    # ~1e-2-level logit error, acceptable for classification.
    assert jnp.allclose(logits_bf16, ref, atol=5e-2, rtol=5e-2), "bf16 mismatch vs reference"

    print("KERNEL_OK")
</pallas_src>

<mosaic_0001>
module attributes {stable_mosaic.version = 11 : i64} {
  func.func @_head_kernel(%arg0: i32, %arg1: memref<8x64xf32, #tpu.memory_space<vmem>>, %arg2: memref<64x32xf32, #tpu.memory_space<vmem>>, %arg3: memref<1x32xf32, #tpu.memory_space<vmem>>, %arg4: memref<32x128xf32, #tpu.memory_space<vmem>>, %arg5: memref<1x128xf32, #tpu.memory_space<vmem>>, %arg6: memref<8x128xf32, #tpu.memory_space<vmem>>) attributes {dimension_semantics = [#tpu.dimension_semantics<parallel>], iteration_bounds = array<i64: 1>, scalar_prefetch = 0 : i64, scratch_operands = 0 : i64, tpu.core_type = #tpu.core_type<tc>, window_params = [{transform_indices = @transform_0, window_bounds = array<i64: 8, 64>}, {pipeline_mode = #tpu.pipeline_mode<synchronous>, transform_indices = @transform_1, window_bounds = array<i64: 64, 32>}, {pipeline_mode = #tpu.pipeline_mode<synchronous>, transform_indices = @transform_2, window_bounds = array<i64: 1, 32>}, {pipeline_mode = #tpu.pipeline_mode<synchronous>, transform_indices = @transform_3, window_bounds = array<i64: 32, 128>}, {pipeline_mode = #tpu.pipeline_mode<synchronous>, transform_indices = @transform_4, window_bounds = array<i64: 1, 128>}, {transform_indices = @transform_5, window_bounds = array<i64: 8, 128>}]} {
    %c0 = arith.constant 0 : index
    %c0_0 = arith.constant 0 : index
    %0 = vector.load %arg1[%c0, %c0_0] : memref<8x64xf32, #tpu.memory_space<vmem>>, vector<8x64xf32>
    %c0_1 = arith.constant 0 : index
    %c0_2 = arith.constant 0 : index
    %1 = vector.load %arg2[%c0_1, %c0_2] : memref<64x32xf32, #tpu.memory_space<vmem>>, vector<64x32xf32>
    %cst = arith.constant dense<0.000000e+00> : vector<8x32xf32>
    %2 = tpu.matmul %0, %1, %cst {dimension_numbers = #tpu.dot_dimension_numbers<[1], [0], [0], [1], [0, 0, 1, 1], [], []>} : vector<8x64xf32>, vector<64x32xf32>, vector<8x32xf32> -> vector<8x32xf32>
    %c0_3 = arith.constant 0 : index
    %c0_4 = arith.constant 0 : index
    %3 = vector.load %arg3[%c0_3, %c0_4] : memref<1x32xf32, #tpu.memory_space<vmem>>, vector<1x32xf32>
    %4 = vector.broadcast %3 : vector<1x32xf32> to vector<8x32xf32>
    %5 = arith.addf %2, %4 : vector<8x32xf32>
    %6 = math.tanh %5 : vector<8x32xf32>
    %c0_5 = arith.constant 0 : index
    %c0_6 = arith.constant 0 : index
    %7 = vector.load %arg4[%c0_5, %c0_6] : memref<32x128xf32, #tpu.memory_space<vmem>>, vector<32x128xf32>
    %cst_7 = arith.constant dense<0.000000e+00> : vector<8x128xf32>
    %8 = tpu.matmul %6, %7, %cst_7 {dimension_numbers = #tpu.dot_dimension_numbers<[1], [0], [0], [1], [0, 0, 1, 1], [], []>} : vector<8x32xf32>, vector<32x128xf32>, vector<8x128xf32> -> vector<8x128xf32>
    %c0_8 = arith.constant 0 : index
    %c0_9 = arith.constant 0 : index
    %9 = vector.load %arg5[%c0_8, %c0_9] : memref<1x128xf32, #tpu.memory_space<vmem>>, vector<1x128xf32>
    %10 = vector.broadcast %9 : vector<1x128xf32> to vector<8x128xf32>
    %11 = arith.addf %8, %10 : vector<8x128xf32>
    %c0_10 = arith.constant 0 : index
    %c0_11 = arith.constant 0 : index
    %12 = vector.load %arg6[%c0_10, %c0_11] : memref<8x128xf32, #tpu.memory_space<vmem>>, vector<8x128xf32>
    tpu.vector_store %arg6[%c0_10, %c0_11], %11 {strides = array<i32>} : memref<8x128xf32, #tpu.memory_space<vmem>>, vector<8x128xf32>,
    return
  }
  func.func @transform_0(%arg0: i32) -> (i32, i32) {
    %c0_i32 = arith.constant 0 : i32
    %c0_i32_0 = arith.constant 0 : i32
    return %arg0, %c0_i32 : i32, i32
  }
  func.func @transform_1(%arg0: i32) -> (i32, i32) {
    %c0_i32 = arith.constant 0 : i32
    %c0_i32_0 = arith.constant 0 : i32
    %c0_i32_1 = arith.constant 0 : i32
    return %c0_i32, %c0_i32_0 : i32, i32
  }
  func.func @transform_2(%arg0: i32) -> (i32, i32) {
    %c0_i32 = arith.constant 0 : i32
    %c0_i32_0 = arith.constant 0 : i32
    %c0_i32_1 = arith.constant 0 : i32
    return %c0_i32, %c0_i32_0 : i32, i32
  }
  func.func @transform_3(%arg0: i32) -> (i32, i32) {
    %c0_i32 = arith.constant 0 : i32
    %c0_i32_0 = arith.constant 0 : i32
    %c0_i32_1 = arith.constant 0 : i32
    return %c0_i32, %c0_i32_0 : i32, i32
  }
  func.func @transform_4(%arg0: i32) -> (i32, i32) {
    %c0_i32 = arith.constant 0 : i32
    %c0_i32_0 = arith.constant 0 : i32
    %c0_i32_1 = arith.constant 0 : i32
    return %c0_i32, %c0_i32_0 : i32, i32
  }
  func.func @transform_5(%arg0: i32) -> (i32, i32) {
    %c0_i32 = arith.constant 0 : i32
    %c0_i32_0 = arith.constant 0 : i32
    return %arg0, %c0_i32 : i32, i32
  }
}

</mosaic_0001>

<bundles_post_ra>
// kernel: tpu_custom_call.1
= control target key start
LH: loop header
LB: loop body
LE: loop exit
PB: predicated region body
PF: predicated region fallthrough
CT: control target
= control target key end

     0   :  { %v308_v3 = vmov 0.0|0.0   ;;  %vm309_vm0 = vmmov 0   ;;  %v310_v6 = vmov 0.0   ;;  %s399_s0 = inlined_call_operand.vmem [shape: f32[8,64], index: 0, kind: input, shape index: {}]   ;;  %s400_s1 = inlined_call_operand.vmem [shape: f32[64,32], index: 1, kind: input, shape index: {}]   ;;  %s401_s2 = inlined_call_operand.vmem [shape: f32[1,32], index: 2, kind: input, shape index: {}]   ;;  %s402_s3 = inlined_call_operand.vmem [shape: f32[32,128], index: 3, kind: input, shape index: {}]   ;;  %s403_s4 = inlined_call_operand.vmem [shape: f32[1,128], index: 4, kind: input, shape index: {}]   ;;  %s404_s5 = inlined_call_operand.hbm [shape: f32[8,128], index: 5, kind: output, shape index: {}]  }
   0x1   :  { %v22_v0 = vld [vmem:[%s400_s1] sm:$0xff]  ;;  %v23_v1 = vld [vmem:[%s400_s1 + $0x8] sm:$0xff]  ;;  %v24_v2 = vld [vmem:[%s400_s1 + $0x10] sm:$0xff]  ;;  %260 = vmatprep.subr.bf16.mxu0 %v308_v3  ;;  %246 = vmatprep.mubr.msk.f32.mxu0 %vm309_vm0, %v310_v6 }
   0x2   :  { %v261_v4 = vpack.c.bf16 %v23_v1, %v22_v0  ;;  %v25_v5 = vld [vmem:[%s400_s1 + $0x18] sm:$0xff]  ;;  %272 = vmatprep.subr.bf16.mxu1 %v308_v3  ;;  %257 = vmatprep.mubr.msk.f32.mxu1 %vm309_vm0, %v310_v6 }
   0x3   :  { %v264_v7 = vpack.c.bf16 %v25_v5, %v24_v2 }
   0x4   :  { %262 = vmatpush3.bf16.msra.mxu0 %v261_v4 }
   0x5   :  { %10 = vsyncpa [#allocation3], 0  ;;  %263 = vmatprep.subr.bf16.mxu0 %v308_v3  ;;  %v26_v8 = vld [vmem:[%s400_s1 + $0x20] sm:$0xff]  ;;  %v27_v9 = vld [vmem:[%s400_s1 + $0x28] sm:$0xff]  ;;  %vm37_vm1 = vcmask 523264   ;;  %vm123_vm2 = vcmask 261120  }
   0x6   :  { %v267_v10 = vpack.c.bf16 %v27_v9, %v26_v8  ;;  %v28_v11 = vld [vmem:[%s400_s1 + $0x30] sm:$0xff]  ;;  %v29_v12 = vld [vmem:[%s400_s1 + $0x38] sm:$0xff]  ;;  %v21_v14 = vld [vmem:[%s399_s0] sm:$0xff] }
   0x7   :  { %v270_v13 = vpack.c.bf16 %v29_v12, %v28_v11  ;;  %v112_v15 = vld [vmem:[%s402_s3] sm:$0xff]  ;;  %v113_v16 = vld [vmem:[%s402_s3 + $0x8] sm:$0xff]  ;;  %v114_v17 = vld [vmem:[%s402_s3 + $0x10] sm:$0xff] }
   0x8   :  { %265 = vmatpush3.bf16.msra.mxu0 %v264_v7  ;;  %v273_v18 = vpack.c.bf16 %v113_v16, %v112_v15  ;;  %v115_v19 = vld [vmem:[%s402_s3 + $0x18] sm:$0xff]  ;;  %v212_v21 = vld [vmem:[%s401_s2] ss:$0 sm:$0xff]  ;;  %s311_s3 = smov [#allocation2]  }
   0x9   :  { %266 = vmatprep.subr.bf16.mxu0 %v308_v3  ;;  %v276_v20 = vpack.c.bf16 %v115_v19, %v114_v17  ;;  %v214_v26 = vld [vmem:[%s403_s4] ss:$0 sm:$0xff]  ;;  %s204_s21 = sshll.u32 %s311_s3, 4  ;;  %s205_s21 = int_to_ptr.vmem [resolvable:$true] %s204_s21 }
   0xa   :  { %274 = vmatpush3.bf16.msra.mxu1 %v273_v18  ;;  %s284_s22 = scalar_lea.vmem %s205_s21, 128  ;;  %p289_p1 = scmp.lt.s32.totalorder %s205_s21, %s205_s21 }
   0xb   :  { %275 = vmatprep.subr.bf16.mxu1 %v308_v3  ;;  %p285_p0 = scmp.ne.s32.totalorder %s205_s21, %s284_s22  ;;  %p290_p2 = scmp.lt.s32.totalorder %s284_s22, %s284_s22 }
   0xc   :  { %268 = vmatpush3.bf16.msra.mxu0 %v267_v10 }
   0xd   :  { %269 = vmatprep.subr.bf16.mxu0 %v308_v3  ;;  %p291_p3 = por %p290_p2, %p289_p1 }
   0xe   :  { %277 = vmatpush3.bf16.msra.mxu1 %v276_v20 }
   0xf   :  { %p292_p4 = pnand %p291_p3, %p285_p0 }
  0x10   :  { %271 = vmatpush3.bf16.msra.mxu0 %v270_v13 }
  0x13   :  { %247 = vmatmul.mubr.msk.f32.vlgmr.msra.gmra.mrb[0].mxu0 %vm37_vm1, %v21_v14 }
  0xe6   :  { %v107_v22 = vpop.f32.mrb[0].mxu0 }
  0xe7   :  { %v108_v23 = vadd.f32 %v212_v21, %v107_v22  ;;  %v248_v24 = vpop.f32.mrb[1].mxu0 }
  0xe9   :  { %282 = vtanh.f32 %v108_v23 }
  0xf3   :  { %v283_v25 = vpop.eup %282 }
  0xf4   :  { %258 = vmatmul.mubr.msk.f32.vlgmr.msra.gmra.mrb[0].mxu1 %vm123_vm2, %v283_v25 }
 0x1c7   :  { %v193_v27 = vpop.f32.mrb[0].mxu1 }
 0x1c8   :  { %v194_v28 = vadd.f32 %v214_v26, %v193_v27  ;;  %v259_v29 = vpop.f32.mrb[1].mxu1 }
 0x1ca   :  { %197 = vst [vmem:[#allocation2] sm:$0xff] %v194_v28 }
 0x1cb   :  { %295 = shalt.err (!%p292_p4)
}
 0x1cc   :  { %s296_s24 = scalar_lea.hbm %s404_s5, 128 }
 0x1cd   :  { %p297_p5 = scmp.ne.s32.totalorder %s404_s5, %s296_s24  ;;  %p300_p6 = scmp.lt.u32.totalorder %s296_s24, %s404_s5 }
 0x1cf   :  { %p302_p7 = pnand %p300_p6, %p297_p5 }
 0x1d1   :  { %305 = shalt.err (!%p302_p7)
}
 0x1d2   :  { %207 = dma.vmem_to_hbm [thread:$0]  %s205_s21, 128, %s404_s5, [#allocation3]  }
 0x1d3   :  { %306 = dma.done.wait [#allocation3], 128  }
 0x1d4   :  { %307 = vsyncadd [#allocation3], 4294967168 }
 0x1d5   :  { %211 = vsyncpa [#allocation3], 1 }

</bundles_post_ra>
